<compile_context>
chip_gen: v5e
topology: v5e:2x2
jax: 0.10.0
libtpu: 0.0.40
codegen_flags: <defaults>
</compile_context>

<pallas_src>
import functools

import jax
import jax.numpy as jnp
from jax import lax
from jax.experimental import pallas as pl
from jax.experimental.pallas import tpu as pltpu


# ----------------------------------------------------------------------------
# Hardware probing (best effort; safe, conservative fallbacks).
# ----------------------------------------------------------------------------
def _device_kind():
    try:
        return (jax.devices()[0].device_kind or "").lower()
    except Exception:
        return ""


def _vmem_capacity_bytes():
    try:
        cap = int(pltpu.get_tpu_info().vmem_capacity_bytes)
        if cap > 0:
            return cap
    except Exception:
        pass
    kind = _device_kind()
    if "v7" in kind:
        return 64 << 20
    if "v5" in kind or "v6" in kind:
        return 128 << 20
    return 64 << 20  # conservative default (valid for every generation)


def _tensorcores_per_chip():
    # v7x has 2 TensorCores per chip; v5e/v6e have 1.
    return 2 if "v7" in _device_kind() else 1


def _sublane_multiple(itemsize):
    # 8 for f32, 16 for bf16, 32 for int8/fp8 (packed sublanes).
    return max(8, 32 // max(1, itemsize))


def _pad_up(x, m):
    return ((x + m - 1) // m) * m


# ----------------------------------------------------------------------------
# Kernel
# ----------------------------------------------------------------------------
def _fuse_kernel(s_ref, o_ref, out_ref,
                 s_sum, s_max, o_sum, o_max,
                 *, C, TL, L, inv_L, needs_mask):
    # s_ref, o_ref : (TN, C, TL) blocks in VMEM (input dtype)
    # out_ref      : (TN, 6*C) block, resident across the L grid axis
    # scratch      : 4 x (TN, C) float32 accumulators
    l = pl.program_id(1)

    s = s_ref[...]
    o = o_ref[...]

    def partials(s_for_sum, s_for_max, o_for_sum, o_for_max):
        # Sums accumulate in f32; max is exact in the input dtype, so only the
        # reduced (TN, C) result is widened.
        return (jnp.sum(s_for_sum, axis=-1, dtype=jnp.float32),
                jnp.max(s_for_max, axis=-1).astype(jnp.float32),
                jnp.sum(o_for_sum, axis=-1, dtype=jnp.float32),
                jnp.max(o_for_max, axis=-1).astype(jnp.float32))

    if needs_mask:
        # Only the last L tile overruns L: pay the mask (iota + 4 selects) on
        # that tile only; every other tile takes the unmasked path.
        def _masked():
            pos = lax.broadcasted_iota(jnp.int32, (1, 1, TL), 2)
            valid = pos < (L - l * TL)          # lane-only mask, broadcast in where
            zero = jnp.zeros((), dtype=s.dtype)
            neg = jnp.asarray(-jnp.inf, dtype=s.dtype)  # float inputs only (asserted)
            return partials(jnp.where(valid, s, zero),
                            jnp.where(valid, s, neg),
                            jnp.where(valid, o, zero),
                            jnp.where(valid, o, neg))

        def _plain():
            return partials(s, s, o, o)

        ps_sum, ps_max, po_sum, po_max = lax.cond(
            l == pl.num_programs(1) - 1, _masked, _plain)
    else:
        ps_sum, ps_max, po_sum, po_max = partials(s, s, o, o)

    @pl.when(l == 0)
    def _():
        s_sum[...] = ps_sum
        s_max[...] = ps_max
        o_sum[...] = po_sum
        o_max[...] = po_max

    @pl.when(l != 0)
    def _():
        s_sum[...] = s_sum[...] + ps_sum
        s_max[...] = jnp.maximum(s_max[...], ps_max)
        o_sum[...] = o_sum[...] + po_sum
        o_max[...] = jnp.maximum(o_max[...], po_max)

    @pl.when(l == pl.num_programs(1) - 1)
    def _():
        sa = s_sum[...] * inv_L
        sm = s_max[...]
        oa = o_sum[...] * inv_L
        om = o_max[...]
        dt = out_ref.dtype
        # Lane-dense static slice stores; no concatenate temporaries.
        # NOTE: on the last N tile, rows read past N are garbage and their
        # reductions land in the out-of-range part of this block; Pallas clips
        # the writeback to N, so they never reach HBM.
        out_ref[:, 0 * C:1 * C] = sa.astype(dt)          # subject avg
        out_ref[:, 1 * C:2 * C] = sm.astype(dt)          # subject max
        out_ref[:, 2 * C:3 * C] = oa.astype(dt)          # object avg
        out_ref[:, 3 * C:4 * C] = om.astype(dt)          # object max
        out_ref[:, 4 * C:5 * C] = (sa * oa).astype(dt)   # product (avg part)
        out_ref[:, 5 * C:6 * C] = (sm * om).astype(dt)   # product (max part)


# ----------------------------------------------------------------------------
# Tiling / VMEM sizing
# ----------------------------------------------------------------------------
def _choose_tiles(N, C, L, itemsize, budget, num_tc):
    """Pick (tn, tl). Grow tl (contiguous lane dim) first for long DMA
    segments, then fill tn from the remaining budget. Keeps each input block
    within `budget` bytes (modulo the minimal legal block for huge C)."""
    sub = _sublane_multiple(itemsize)
    row = C * itemsize                         # bytes per n per L element

    # tl first: whole L if one (1, C, L) row fits, else the largest 128-multiple.
    if row * L <= budget:
        tl = L
    else:
        tl = max(128, (budget // (row * 128)) * 128)   # < L by construction

    tn = budget // max(1, row * tl)
    if tn >= N:
        tn = N                                  # full N dim: always legal
    elif tn >= sub:
        tn = (tn // sub) * sub                  # output block needs tn % sub == 0
    else:
        # Rounding tn up to the sublane multiple would overshoot the budget by
        # up to sub x; shrink tl instead so tn * C * tl * itemsize <= budget.
        tn = sub if N > sub else N
        tl_fit = (budget // max(1, tn * row * 128)) * 128
        tl = max(128, min(tl, tl_fit))

    # v7x: the "parallel" N axis needs >= 2 tiles to feed both TensorCores.
    if num_tc >= 2 and tn >= N and N > sub:
        cand = _pad_up(-(-N // 2), sub)         # ceil(N/2) rounded to sublane mult
        if cand < N:
            tn = cand
    return tn, tl


def _vmem_limit_bytes(tn, tl, C, itemsize, vmem_cap):
    """2 inputs x 2 pipeline buffers x padded block + output + scratch + margin."""
    sub_in = _sublane_multiple(itemsize)
    in_block = tn * _pad_up(C, sub_in) * _pad_up(tl, 128) * itemsize
    out_block = _pad_up(tn, sub_in) * _pad_up(6 * C, 128) * itemsize
    scratch = 4 * _pad_up(tn, 8) * _pad_up(C, 128) * 4
    need = 2 * 2 * in_block + 2 * out_block + scratch
    limit = max(need + (4 << 20), 16 << 20)
    return int(min(limit, vmem_cap - (8 << 20)))


def _pallas_fused(s_in, o_in, *, tn=None, tl=None):
    N, C, L = s_in.shape
    itemsize = jnp.dtype(s_in.dtype).itemsize

    vmem_cap = _vmem_capacity_bytes()
    num_tc = _tensorcores_per_chip()
    # Per-input block budget: ~6 MiB on v7x (64 MiB VMEM), ~12 MiB on v5e/v6e.
    budget = (6 << 20) if vmem_cap <= (64 << 20) else (12 << 20)

    auto_tn, auto_tl = _choose_tiles(N, C, L, itemsize, budget, num_tc)
    tn = auto_tn if tn is None else min(tn, N)
    tl = auto_tl if tl is None else min(tl, L)

    grid = (pl.cdiv(N, tn), pl.cdiv(L, tl))
    needs_mask = (L % tl) != 0

    kernel = functools.partial(
        _fuse_kernel, C=C, TL=tl, L=L,
        inv_L=float(1.0 / L), needs_mask=needs_mask)

    flops = 4 * N * C * L + 8 * N * C
    bytes_accessed = 2 * N * C * L * itemsize + N * 6 * C * itemsize

    return pl.pallas_call(
        kernel,
        out_shape=jax.ShapeDtypeStruct((N, 6 * C), s_in.dtype),
        grid_spec=pltpu.PrefetchScalarGridSpec(
            num_scalar_prefetch=0,
            grid=grid,
            in_specs=[
                pl.BlockSpec((tn, C, tl), lambda n, l: (n, 0, l)),
                pl.BlockSpec((tn, C, tl), lambda n, l: (n, 0, l)),
            ],
            # Same output block across the L (reduction) axis -> stays resident.
            out_specs=pl.BlockSpec((tn, 6 * C), lambda n, l: (n, 0)),
            scratch_shapes=[pltpu.VMEM((tn, C), jnp.float32)] * 4,
        ),
        compiler_params=pltpu.CompilerParams(
            dimension_semantics=("parallel", "arbitrary"),
            vmem_limit_bytes=_vmem_limit_bytes(tn, tl, C, itemsize, vmem_cap),
        ),
        cost_estimate=pl.CostEstimate(
            flops=flops, transcendentals=0, bytes_accessed=bytes_accessed),
    )(s_in, o_in)


# ----------------------------------------------------------------------------
# Reference / wrapper
# ----------------------------------------------------------------------------
def _pure_jnp(s, o):
    s_avg = jnp.mean(s, axis=-1)
    s_max = jnp.max(s, axis=-1)
    o_avg = jnp.mean(o, axis=-1)
    o_max = jnp.max(o, axis=-1)
    subj = jnp.concatenate([s_avg, s_max], axis=-1)
    obj = jnp.concatenate([o_avg, o_max], axis=-1)
    return jnp.concatenate([subj, obj, subj * obj], axis=-1)


def entity_avg_max_product_feats(subject_feats_in, object_feats_in, bert_feat=None,
                                 *, tn=None, tl=None, force_pallas=False):
    """JAX/Pallas equivalent of the PyTorch module's forward pass."""
    # bert_feat is accepted for signature parity but unused (as in the reference).
    del bert_feat
    N, C, L = subject_feats_in.shape
    assert object_feats_in.shape == (N, C, L)
    assert jnp.issubdtype(subject_feats_in.dtype, jnp.floating), (
        "entity_avg_max_product_feats expects floating-point inputs "
        "(torch Adaptive{Avg,Max}Pool1d are float ops; -inf max-identity).")

    # Tiny / narrow (6C < 128 lanes) problems: fixed pallas_call overhead and
    # masked partial output stores make the kernel a loss; let XLA fuse.
    use_pallas = force_pallas or ((N * C * L) >= (1 << 18) and 6 * C >= 128)
    if use_pallas:
        out2d = _pallas_fused(subject_feats_in, object_feats_in, tn=tn, tl=tl)
    else:
        out2d = _pure_jnp(subject_feats_in, object_feats_in)

    out = out2d[:, None, :]            # (N, 1, 6C)  == torch cat result
    if out.shape[0] == 1:              # torch's .squeeze(0)
        out = out[0]
    return out


def _reference(subject_feats_in, object_feats_in):
    out = _pure_jnp(subject_feats_in, object_feats_in)[:, None, :]
    if out.shape[0] == 1:
        out = out[0]
    return out


if __name__ == "__main__":
    key = jax.random.PRNGKey(0)
    k1, k2, k3, k4, k5 = jax.random.split(key, 5)

    # Small shapes consistent with the module: batch=2, channels=4, length=16.
    N, C, L = 2, 4, 16
    subject_feats_in = jax.random.normal(k1, (N, C, L), dtype=jnp.float32)
    object_feats_in = jax.random.normal(k2, (N, C, L), dtype=jnp.float32)
    bert_feat = jax.random.normal(k3, (N, 32), dtype=jnp.float32)  # unused by forward

    out_small = entity_avg_max_product_feats(
        subject_feats_in, object_feats_in, bert_feat, force_pallas=True)
    out_small = jax.block_until_ready(out_small)
    ref_small = _reference(subject_feats_in, object_feats_in)
    assert out_small.shape == ref_small.shape == (N, 1, 6 * C), (out_small.shape, ref_small.shape)
    assert jnp.allclose(out_small, ref_small, atol=1e-5, rtol=1e-5)

    # Larger case (forced tiles): exercises N tiling + N padding (20 % 8 != 0),
    # L tiling (accumulator path) and last-L-tile masking (300 % 128 != 0).
    N2, C2, L2 = 20, 128, 300
    s_big = jax.random.normal(k4, (N2, C2, L2), dtype=jnp.float32)
    o_big = jax.random.normal(k5, (N2, C2, L2), dtype=jnp.float32)
    out_big = entity_avg_max_product_feats(
        s_big, o_big, None, tn=8, tl=128, force_pallas=True)
    out_big = jax.block_until_ready(out_big)
    ref_big = _reference(s_big, o_big)
    assert out_big.shape == ref_big.shape == (N2, 1, 6 * C2), (out_big.shape, ref_big.shape)
    assert jnp.allclose(out_big, ref_big, atol=1e-4, rtol=1e-5)

    # Auto-tiled path: exercises _choose_tiles, vmem_limit_bytes and the
    # >=2-N-tile split on v7x.
    out_auto = entity_avg_max_product_feats(s_big, o_big, None, force_pallas=True)
    out_auto = jax.block_until_ready(out_auto)
    assert jnp.allclose(out_auto, ref_big, atol=1e-4, rtol=1e-5)

    print("KERNEL_OK")
</pallas_src>

<mosaic_0001>
module attributes {stable_mosaic.version = 11 : i64} {
  func.func @_fuse_kernel(%arg0: i32, %arg1: i32, %arg2: memref<2x4x16xf32, #tpu.memory_space<vmem>>, %arg3: memref<2x4x16xf32, #tpu.memory_space<vmem>>, %arg4: memref<2x24xf32, #tpu.memory_space<vmem>>, %arg5: memref<2x4xf32, #tpu.memory_space<vmem>>, %arg6: memref<2x4xf32, #tpu.memory_space<vmem>>, %arg7: memref<2x4xf32, #tpu.memory_space<vmem>>, %arg8: memref<2x4xf32, #tpu.memory_space<vmem>>) attributes {dimension_semantics = [#tpu.dimension_semantics<parallel>, #tpu.dimension_semantics<arbitrary>], iteration_bounds = array<i64: 1, 1>, scalar_prefetch = 0 : i64, scratch_operands = 4 : i64, tpu.core_type = #tpu.core_type<tc>, window_params = [{transform_indices = @transform_0, window_bounds = array<i64: 2, 4, 16>}, {transform_indices = @transform_1, window_bounds = array<i64: 2, 4, 16>}, {transform_indices = @transform_2, window_bounds = array<i64: 2, 24>}]} {
    %c0 = arith.constant 0 : index
    %c0_0 = arith.constant 0 : index
    %c0_1 = arith.constant 0 : index
    %0 = vector.load %arg2[%c0, %c0_0, %c0_1] : memref<2x4x16xf32, #tpu.memory_space<vmem>>, vector<2x4x16xf32>
    %c0_2 = arith.constant 0 : index
    %c0_3 = arith.constant 0 : index
    %c0_4 = arith.constant 0 : index
    %1 = vector.load %arg3[%c0_2, %c0_3, %c0_4] : memref<2x4x16xf32, #tpu.memory_space<vmem>>, vector<2x4x16xf32>
    %cst = arith.constant dense<0.000000e+00> : vector<2x4xf32>
    %2 = vector.multi_reduction <add>, %0, %cst [2] : vector<2x4x16xf32> to vector<2x4xf32>
    %cst_5 = arith.constant dense<0xFF800000> : vector<2x4xf32>
    %3 = vector.multi_reduction <maximumf>, %0, %cst_5 [2] : vector<2x4x16xf32> to vector<2x4xf32>
    %cst_6 = arith.constant dense<0.000000e+00> : vector<2x4xf32>
    %4 = vector.multi_reduction <add>, %1, %cst_6 [2] : vector<2x4x16xf32> to vector<2x4xf32>
    %cst_7 = arith.constant dense<0xFF800000> : vector<2x4xf32>
    %5 = vector.multi_reduction <maximumf>, %1, %cst_7 [2] : vector<2x4x16xf32> to vector<2x4xf32>
    %c0_i32 = arith.constant 0 : i32
    %6 = arith.cmpi eq, %arg1, %c0_i32 : i32
    %7 = arith.extui %6 : i1 to i32
    %c0_i32_8 = arith.constant 0 : i32
    %8 = arith.cmpi ne, %7, %c0_i32_8 : i32
    scf.if %8 {
      %c0_13 = arith.constant 0 : index
      %c0_14 = arith.constant 0 : index
      %15 = vector.load %arg5[%c0_13, %c0_14] : memref<2x4xf32, #tpu.memory_space<vmem>>, vector<2x4xf32>
      tpu.vector_store %arg5[%c0_13, %c0_14], %2 {strides = array<i32>} : memref<2x4xf32, #tpu.memory_space<vmem>>, vector<2x4xf32>,
      %c0_15 = arith.constant 0 : index
      %c0_16 = arith.constant 0 : index
      %16 = vector.load %arg6[%c0_15, %c0_16] : memref<2x4xf32, #tpu.memory_space<vmem>>, vector<2x4xf32>
      tpu.vector_store %arg6[%c0_15, %c0_16], %3 {strides = array<i32>} : memref<2x4xf32, #tpu.memory_space<vmem>>, vector<2x4xf32>,
      %c0_17 = arith.constant 0 : index
      %c0_18 = arith.constant 0 : index
      %17 = vector.load %arg7[%c0_17, %c0_18] : memref<2x4xf32, #tpu.memory_space<vmem>>, vector<2x4xf32>
      tpu.vector_store %arg7[%c0_17, %c0_18], %4 {strides = array<i32>} : memref<2x4xf32, #tpu.memory_space<vmem>>, vector<2x4xf32>,
      %c0_19 = arith.constant 0 : index
      %c0_20 = arith.constant 0 : index
      %18 = vector.load %arg8[%c0_19, %c0_20] : memref<2x4xf32, #tpu.memory_space<vmem>>, vector<2x4xf32>
      tpu.vector_store %arg8[%c0_19, %c0_20], %5 {strides = array<i32>} : memref<2x4xf32, #tpu.memory_space<vmem>>, vector<2x4xf32>,
    } else {
    }
    %c0_i32_9 = arith.constant 0 : i32
    %9 = arith.cmpi ne, %arg1, %c0_i32_9 : i32
    %10 = arith.extui %9 : i1 to i32
    %c0_i32_10 = arith.constant 0 : i32
    %11 = arith.cmpi ne, %10, %c0_i32_10 : i32
    scf.if %11 {
      %c0_13 = arith.constant 0 : index
      %c0_14 = arith.constant 0 : index
      %15 = vector.load %arg5[%c0_13, %c0_14] : memref<2x4xf32, #tpu.memory_space<vmem>>, vector<2x4xf32>
      %16 = arith.addf %15, %2 : vector<2x4xf32>
      %c0_15 = arith.constant 0 : index
      %c0_16 = arith.constant 0 : index
      %17 = vector.load %arg5[%c0_15, %c0_16] : memref<2x4xf32, #tpu.memory_space<vmem>>, vector<2x4xf32>
      tpu.vector_store %arg5[%c0_15, %c0_16], %16 {strides = array<i32>} : memref<2x4xf32, #tpu.memory_space<vmem>>, vector<2x4xf32>,
      %c0_17 = arith.constant 0 : index
      %c0_18 = arith.constant 0 : index
      %18 = vector.load %arg6[%c0_17, %c0_18] : memref<2x4xf32, #tpu.memory_space<vmem>>, vector<2x4xf32>
      %19 = arith.maximumf %18, %3 : vector<2x4xf32>
      %c0_19 = arith.constant 0 : index
      %c0_20 = arith.constant 0 : index
      %20 = vector.load %arg6[%c0_19, %c0_20] : memref<2x4xf32, #tpu.memory_space<vmem>>, vector<2x4xf32>
      tpu.vector_store %arg6[%c0_19, %c0_20], %19 {strides = array<i32>} : memref<2x4xf32, #tpu.memory_space<vmem>>, vector<2x4xf32>,
      %c0_21 = arith.constant 0 : index
      %c0_22 = arith.constant 0 : index
      %21 = vector.load %arg7[%c0_21, %c0_22] : memref<2x4xf32, #tpu.memory_space<vmem>>, vector<2x4xf32>
      %22 = arith.addf %21, %4 : vector<2x4xf32>
      %c0_23 = arith.constant 0 : index
      %c0_24 = arith.constant 0 : index
      %23 = vector.load %arg7[%c0_23, %c0_24] : memref<2x4xf32, #tpu.memory_space<vmem>>, vector<2x4xf32>
      tpu.vector_store %arg7[%c0_23, %c0_24], %22 {strides = array<i32>} : memref<2x4xf32, #tpu.memory_space<vmem>>, vector<2x4xf32>,
      %c0_25 = arith.constant 0 : index
      %c0_26 = arith.constant 0 : index
      %24 = vector.load %arg8[%c0_25, %c0_26] : memref<2x4xf32, #tpu.memory_space<vmem>>, vector<2x4xf32>
      %25 = arith.maximumf %24, %5 : vector<2x4xf32>
      %c0_27 = arith.constant 0 : index
      %c0_28 = arith.constant 0 : index
      %26 = vector.load %arg8[%c0_27, %c0_28] : memref<2x4xf32, #tpu.memory_space<vmem>>, vector<2x4xf32>
      tpu.vector_store %arg8[%c0_27, %c0_28], %25 {strides = array<i32>} : memref<2x4xf32, #tpu.memory_space<vmem>>, vector<2x4xf32>,
    } else {
    }
    %c0_i32_11 = arith.constant 0 : i32
    %12 = arith.cmpi eq, %arg1, %c0_i32_11 : i32
    %13 = arith.extui %12 : i1 to i32
    %c0_i32_12 = arith.constant 0 : i32
    %14 = arith.cmpi ne, %13, %c0_i32_12 : i32
    scf.if %14 {
      %c0_13 = arith.constant 0 : index
      %c0_14 = arith.constant 0 : index
      %15 = vector.load %arg5[%c0_13, %c0_14] : memref<2x4xf32, #tpu.memory_space<vmem>>, vector<2x4xf32>
      %cst_15 = arith.constant 6.250000e-02 : f32
      %16 = vector.broadcast %cst_15 : f32 to vector<2x4xf32>
      %17 = arith.mulf %15, %16 : vector<2x4xf32>
      %c0_16 = arith.constant 0 : index
      %c0_17 = arith.constant 0 : index
      %18 = vector.load %arg6[%c0_16, %c0_17] : memref<2x4xf32, #tpu.memory_space<vmem>>, vector<2x4xf32>
      %c0_18 = arith.constant 0 : index
      %c0_19 = arith.constant 0 : index
      %19 = vector.load %arg7[%c0_18, %c0_19] : memref<2x4xf32, #tpu.memory_space<vmem>>, vector<2x4xf32>
      %cst_20 = arith.constant 6.250000e-02 : f32
      %20 = vector.broadcast %cst_20 : f32 to vector<2x4xf32>
      %21 = arith.mulf %19, %20 : vector<2x4xf32>
      %c0_21 = arith.constant 0 : index
      %c0_22 = arith.constant 0 : index
      %22 = vector.load %arg8[%c0_21, %c0_22] : memref<2x4xf32, #tpu.memory_space<vmem>>, vector<2x4xf32>
      %c0_23 = arith.constant 0 : index
      %c0_24 = arith.constant 0 : index
      %23 = vector.load %arg4[%c0_23, %c0_24] : memref<2x24xf32, #tpu.memory_space<vmem>>, vector<2x4xf32>
      tpu.vector_store %arg4[%c0_23, %c0_24], %17 {strides = array<i32>} : memref<2x24xf32, #tpu.memory_space<vmem>>, vector<2x4xf32>,
      %c0_25 = arith.constant 0 : index
      %c4 = arith.constant 4 : index
      %24 = vector.load %arg4[%c0_25, %c4] : memref<2x24xf32, #tpu.memory_space<vmem>>, vector<2x4xf32>
      tpu.vector_store %arg4[%c0_25, %c4], %18 {strides = array<i32>} : memref<2x24xf32, #tpu.memory_space<vmem>>, vector<2x4xf32>,
      %c0_26 = arith.constant 0 : index
      %c8 = arith.constant 8 : index
      %25 = vector.load %arg4[%c0_26, %c8] : memref<2x24xf32, #tpu.memory_space<vmem>>, vector<2x4xf32>
      tpu.vector_store %arg4[%c0_26, %c8], %21 {strides = array<i32>} : memref<2x24xf32, #tpu.memory_space<vmem>>, vector<2x4xf32>,
      %c0_27 = arith.constant 0 : index
      %c12 = arith.constant 12 : index
      %26 = vector.load %arg4[%c0_27, %c12] : memref<2x24xf32, #tpu.memory_space<vmem>>, vector<2x4xf32>
      tpu.vector_store %arg4[%c0_27, %c12], %22 {strides = array<i32>} : memref<2x24xf32, #tpu.memory_space<vmem>>, vector<2x4xf32>,
      %27 = arith.mulf %17, %21 : vector<2x4xf32>
      %c0_28 = arith.constant 0 : index
      %c16 = arith.constant 16 : index
      %28 = vector.load %arg4[%c0_28, %c16] : memref<2x24xf32, #tpu.memory_space<vmem>>, vector<2x4xf32>
      tpu.vector_store %arg4[%c0_28, %c16], %27 {strides = array<i32>} : memref<2x24xf32, #tpu.memory_space<vmem>>, vector<2x4xf32>,
      %29 = arith.mulf %18, %22 : vector<2x4xf32>
      %c0_29 = arith.constant 0 : index
      %c20 = arith.constant 20 : index
      %30 = vector.load %arg4[%c0_29, %c20] : memref<2x24xf32, #tpu.memory_space<vmem>>, vector<2x4xf32>
      tpu.vector_store %arg4[%c0_29, %c20], %29 {strides = array<i32>} : memref<2x24xf32, #tpu.memory_space<vmem>>, vector<2x4xf32>,
    } else {
    }
    return
  }
  func.func @transform_0(%arg0: i32, %arg1: i32) -> (i32, i32, i32) {
    %c0_i32 = arith.constant 0 : i32
    %c0_i32_0 = arith.constant 0 : i32
    return %arg0, %c0_i32, %arg1 : i32, i32, i32
  }
  func.func @transform_1(%arg0: i32, %arg1: i32) -> (i32, i32, i32) {
    %c0_i32 = arith.constant 0 : i32
    %c0_i32_0 = arith.constant 0 : i32
    return %arg0, %c0_i32, %arg1 : i32, i32, i32
  }
  func.func @transform_2(%arg0: i32, %arg1: i32) -> (i32, i32) {
    %c0_i32 = arith.constant 0 : i32
    %c0_i32_0 = arith.constant 0 : i32
    return %arg0, %c0_i32 : i32, i32
  }
}

</mosaic_0001>

<bundles_post_ra>
// kernel: tpu_custom_call.1
= control target key start
LH: loop header
LB: loop body
LE: loop exit
PB: predicated region body
PF: predicated region fallthrough
CT: control target
= control target key end

     0   :  { %7 = vsyncpa [#allocation7], 0  ;;  %s354_s0 = inlined_call_operand.hbm [shape: f32[2,4,16], index: 0, kind: input, shape index: {}]   ;;  %s355_s1 = inlined_call_operand.hbm [shape: f32[2,4,16], index: 1, kind: input, shape index: {}]   ;;  %s356_s2 = inlined_call_operand.hbm [shape: f32[2,24], index: 2, kind: output, shape index: {}]  }
   0x1   :  { %8 = vsyncpa [#allocation10], 0 }
   0x2   :  { %9 = vsyncpa [#allocation8], 0  ;;  %s14_s11 = sshll.u32 %s354_s0, 4  ;;  %s301_s12 = smov [#allocation6]   ;;  %s15_s11 = int_to_ptr.hbm [resolvable:$true] %s14_s11 }
   0x3   :  { %s16_s13 = sshll.u32 %s301_s12, 4  ;;  %s27_s16 = sshll.u32 %s355_s1, 4  ;;  %s17_s13 = int_to_ptr.vmem [resolvable:$true] %s16_s13  ;;  %s28_s16 = int_to_ptr.hbm [resolvable:$true] %s27_s16 }
   0x4   :  { %s302_s17 = smov 64   ;;  %s303_s18 = smov 4  }
   0x5   :  { %22 = dma.hbm_to_vmem [thread:$0]  %s15_s11, 128, %s17_s13, [#allocation7], %s302_s17, %s302_s17, %s303_s18  }
   0x6   :  { %s304_s19 = smov [#allocation9]  }
   0x7   :  { %s29_s20 = sshll.u32 %s304_s19, 4  ;;  %s30_s20 = int_to_ptr.vmem [resolvable:$true] %s29_s20 }
   0x8   :  { %35 = dma.hbm_to_vmem [thread:$0]  %s28_s16, 128, %s30_s20, [#allocation10], %s302_s17, %s302_s17, %s303_s18  }
   0x9   :  { %295 = dma.done.wait [#allocation7], 128  }
   0xa   :  { %296 = vsyncadd [#allocation7], 4294967168 }
   0xb   :  { %297 = dma.done.wait [#allocation10], 128  }
   0xc   :  { %298 = vsyncadd [#allocation10], 4294967168  ;;  %vm48_vm0 = vcmask 125952   ;;  %v46_v0 = vld [vmem:[#allocation9] sm:$0xf]  ;;  %v79_v14 = vlaneseq  ;;  %vm83_vm1 = vcmask 1041409  }
   0xd   :  { %v44_v1 = vld [vmem:[#allocation6] sm:$0xf]  ;;  %v61_v2 = vsel %vm48_vm0, %v46_v0, 0.0  ;;  %v47_v5 = vld [vmem:[#allocation9 + $0x4] sm:$0xf]  ;;  %v67_v11 = vsel %vm48_vm0, %v46_v0, -inf }
   0xe   :  { %v55_v3 = vsel %vm48_vm0, %v44_v1, -inf  ;;  %v49_v4 = vsel %vm48_vm0, %v44_v1, 0.0  ;;  %62 = vadd.xlane.f32.xlu1 %v61_v2  ;;  %v45_v6 = vld [vmem:[#allocation6 + $0x4] sm:$0xf]  ;;  %v64_v7 = vsel %vm48_vm0, %v47_v5, 0.0  ;;  %v70_v10 = vsel %vm48_vm0, %v47_v5, -inf }
   0xf   :  { %56 = vmax.xlane.f32.xlu2 %v55_v3  ;;  %50 = vadd.xlane.f32.xlu0 %v49_v4  ;;  %v58_v8 = vsel %vm48_vm0, %v45_v6, -inf  ;;  %v52_v9 = vsel %vm48_vm0, %v45_v6, 0.0  ;;  %v80_v16 = vand.u32 127, %v79_v14  ;;  %vm86_vm2 = vcmask 25600   ;;  %s305_s0 = smov 8   ;;  %s306_s1 = smov 16  }
  0x10   :  { %s307_s21 = smov 12   ;;  %s308_s22 = smov 20   ;;  %vm168_vm3 = vcmask 58400   ;;  %vm174_vm4 = vcmask 91200   ;;  %vm180_vm5 = vcmask 124000   ;;  %vm187_vm6 = vcmask 156800  }
  0x11   :  { %s309_s23 = smov [#allocation11]   ;;  %s203_s27 = sshll.u32 %s356_s2, 4  ;;  %vm194_vm7 = vcmask 189600   ;;  %s204_s27 = int_to_ptr.hbm [resolvable:$true] %s203_s27 }
  0x12   :  { %s201_s24 = sshll.u32 %s309_s23, 4  ;;  %s202_s24 = int_to_ptr.vmem [resolvable:$true] %s201_s24 }
  0x16   :  { %65 = vadd.xlane.f32.xlu1 %v64_v7 }
  0x17   :  { %59 = vmax.xlane.f32.xlu2 %v58_v8  ;;  %53 = vadd.xlane.f32.xlu0 %v52_v9 }
  0x1e   :  { %71 = vmax.xlane.f32.xlu1 %v70_v10 }
  0x1f   :  { %68 = vmax.xlane.f32.xlu0 %v67_v11 }
  0x81   :  { %v63_v12 = vpop.xlane.xlu1 %62 }
  0x82   :  { %v57_v13 = vpop.xlane.xlu2 %56  ;;  %v51_v15 = vpop.xlane.xlu0 %50  ;;  %v97_v20 = vperm.slane %v63_v12, %v80_v16 }
  0x83   :  { %v90_v17 = vperm.slane %v57_v13, %v80_v16  ;;  %v81_v24 = vperm.slane %v51_v15, %v80_v16 }
  0x89   :  { %v66_v18 = vpop.xlane.xlu1 %65 }
  0x8a   :  { %v60_v19 = vpop.xlane.xlu2 %59  ;;  %v98_v21 = vperm.slane %v66_v18, %v80_v16  ;;  %v54_v23 = vpop.xlane.xlu0 %53 }
  0x8b   :  { %v91_v22 = vperm.slane %v60_v19, %v80_v16  ;;  %v82_v25 = vperm.slane %v54_v23, %v80_v16 }
  0x8c   :  { %v99_v26 = vsel %vm83_vm1, %v98_v21, %v97_v20 }
  0x8d   :  { %v92_v27 = vsel %vm83_vm1, %v91_v22, %v90_v17  ;;  %101 = vst.msk [vmem:[#allocation4] sm:$0x3] %vm86_vm2, %v99_v26  ;;  %v84_v28 = vsel %vm83_vm1, %v82_v25, %v81_v24 }
  0x8e   :  { %94 = vst.msk [vmem:[#allocation3] sm:$0x3] %vm86_vm2, %v92_v27 }
  0x8f   :  { %87 = vst.msk [vmem:[#allocation2] sm:$0x3] %vm86_vm2, %v84_v28 }
  0x91   :  { %v72_v29 = vpop.xlane.xlu1 %71 }
  0x92   :  { %v105_v30 = vperm.slane %v72_v29, %v80_v16  ;;  %v69_v31 = vpop.xlane.xlu0 %68 }
  0x93   :  { %v104_v32 = vperm.slane %v69_v31, %v80_v16 }
  0x94   :  { %v159_v33 = vld [vmem:[#allocation4] sm:$0x3] }
  0x95   :  { %v106_v34 = vsel %vm83_vm1, %v105_v30, %v104_v32  ;;  %v158_v35 = vld [vmem:[#allocation3] sm:$0x3]  ;;  %v160_v36 = vmul.f32 0.0625, %v159_v33 }
  0x96   :  { %108 = vst.msk [vmem:[#allocation5] sm:$0x3] %vm86_vm2, %v106_v34  ;;  %165 = vrot.lane.b32.xlu2 %v158_v35, %s303_s18  ;;  %v156_v37 = vld [vmem:[#allocation2] sm:$0x3] }
  0x97   :  { %171 = vrot.lane.b32.xlu0 %v160_v36, %s305_s0  ;;  %v157_v38 = vmul.f32 0.0625, %v156_v37 }
  0x99   :  { %163 = vst.msk [vmem:[#allocation11] sm:$0x3] %vm86_vm2, %v157_v38  ;;  %v182_v39 = vmul.f32 %v160_v36, %v157_v38 }
  0x9d   :  { %v161_v40 = vld [vmem:[#allocation5] sm:$0x3] }
  0x9e   :  { %v189_v41 = vmul.f32 %v161_v40, %v158_v35  ;;  %184 = vrot.lane.b32.xlu2 %v182_v39, %s306_s1  ;;  %177 = vrot.lane.b32.xlu1 %v161_v40, %s307_s21 }
  0xa0   :  { %191 = vrot.lane.b32.xlu0 %v189_v41, %s308_s22 }
  0xf0   :  { %v166_v42 = vpop.permute.xlu2 %165 }
  0xf1   :  { %169 = vst.msk [vmem:[#allocation11] sm:$0x3] %vm168_vm3, %v166_v42 }
  0xf8   :  { %v185_v45 = vpop.permute.xlu2 %184 }
 0x109   :  { %v172_v43 = vpop.permute.xlu0 %171 }
 0x10a   :  { %175 = vst.msk [vmem:[#allocation11] sm:$0x3] %vm174_vm4, %v172_v43 }
 0x110   :  { %v178_v44 = vpop.permute.xlu1 %177 }
 0x111   :  { %181 = vst.msk [vmem:[#allocation11] sm:$0x3] %vm180_vm5, %v178_v44 }
 0x112   :  { %v192_v46 = vpop.permute.xlu0 %191  ;;  %188 = vst.msk [vmem:[#allocation11] sm:$0x3] %vm187_vm6, %v185_v45 }
 0x113   :  { %195 = vst.msk [vmem:[#allocation11] sm:$0x3] %vm194_vm7, %v192_v46 }
 0x114   :  { %206 = dma.vmem_to_hbm [thread:$0]  %s202_s24, 32, %s204_s27, [#allocation8]  }
 0x115   :  { %299 = dma.done.wait [#allocation8], 32  }
 0x116   :  { %300 = vsyncadd [#allocation8], 4294967264 }
 0x117   :  { %211 = vsyncpa [#allocation7], 1 }
 0x118   :  { %212 = vsyncpa [#allocation10], 1 }
 0x119   :  { %213 = vsyncpa [#allocation8], 1 }

</bundles_post_ra>
